<compile_context>
chip_gen: v7x
topology: tpu7x:2x2x1
jax: 0.10.0
libtpu: 0.0.40
codegen_flags: <defaults>
</compile_context>

<pallas_src>
import jax
import jax.numpy as jnp
from jax.experimental import pallas as pl
from jax.experimental.pallas import tpu as pltpu


def _round_up(a, b):
    return (a + b - 1) // b * b


def _padded_rows(c, dtype):
    # Sublane padding of the second-to-last dim: f32 -> 8, bf16 -> 16, int8/bool -> 32.
    itemsize = jnp.dtype(dtype).itemsize
    mult = max(8, 32 // max(itemsize, 1))
    return _round_up(max(c, 1), mult)


def _filtered_softmax_kernel(x_ref, lbl_ref, o_ref):
    # Block: (1, C, tl) with the full channel dim resident.
    # Softmax over axis=1 (channels), multiply by (broadcasting) label, store.
    x = x_ref[...].astype(jnp.float32)
    m = jnp.max(x, axis=1, keepdims=True)              # (1, 1, tl)
    e = jnp.exp(x - m)                                  # (1, C, tl), <= 1
    s = jnp.sum(e, axis=1, keepdims=True)               # (1, 1, tl)
    r = pl.reciprocal(s, approx=True)                   # EUP slot, ~free
    inv = r * (2.0 - s * r)                             # one Newton step -> f32-accurate
    lbl = lbl_ref[...].astype(jnp.float32)              # broadcasts over size-1 dims
    o_ref[...] = (e * inv * lbl).astype(o_ref.dtype)


def _prep_label(label, x_shape, M):
    """Reshape label to (Nl, Cl, Ml), Nl in {1,N}, Cl in {1,C}, Ml in {1,M},
    keeping the native dtype and never materializing N/C broadcasts."""
    ndim = len(x_shape)
    pad = (1,) * (ndim - label.ndim) + tuple(label.shape)
    for a, b in zip(pad, x_shape):
        assert a == 1 or a == b, "label must be broadcastable into x"
    Nl, Cl = pad[0], pad[1]
    trailing = pad[2:]
    x_trailing = tuple(x_shape[2:])
    if all(t == 1 for t in trailing):
        return label.reshape(Nl, Cl, 1), Nl, Cl, 1
    if trailing == x_trailing:
        return label.reshape(Nl, Cl, M), Nl, Cl, M
    # Mixed partial broadcast over spatial dims only: expand spatial dims
    # (native dtype), still without materializing N/C broadcast dims.
    l3 = jnp.broadcast_to(label.reshape(pad), (Nl, Cl) + x_trailing).reshape(Nl, Cl, M)
    return l3, Nl, Cl, M


def filtered_softmax(x, label):
    """softmax(x, dim=1) * label for x of shape (N, C, ...); label broadcasts into x."""
    orig_shape = x.shape
    assert x.ndim >= 2, "expected at least (N, C)"
    # TODO(synk): labels that broadcast x *up* (extra leading dims) would enlarge
    # the output in PyTorch; not handled here.
    assert label.ndim <= x.ndim, "label must broadcast into x's shape"

    N, C = x.shape[0], x.shape[1]
    M = 1
    for d in x.shape[2:]:
        M *= d
    M = max(M, 1)
    out_dtype = jnp.promote_types(x.dtype, label.dtype)

    lanes = 128
    # Small-M fallback: fold batch onto the lane axis (one transpose) so the
    # output last dim is lane-dense instead of <128-wide masked stores.
    transposed = (M < lanes) and (N > 1)
    if transposed:
        lbl_full = jnp.broadcast_to(label, orig_shape)                 # native dtype kept
        x3 = jnp.moveaxis(x.reshape(N, C, M), 0, 1).reshape(1, C, N * M)
        l3 = jnp.moveaxis(lbl_full.reshape(N, C, M), 0, 1).reshape(1, C, N * M)
        Nk, Mk = 1, N * M
        Nl, Cl, Ml = 1, C, N * M
    else:
        x3 = x.reshape(N, C, M)
        l3, Nl, Cl, Ml = _prep_label(label, x.shape, M)
        Nk, Mk = N, M

    label_lane_tiled = (Ml == Mk)

    itemsize_x = jnp.dtype(x3.dtype).itemsize
    itemsize_o = jnp.dtype(out_dtype).itemsize
    itemsize_l = jnp.dtype(l3.dtype).itemsize
    # Per-lane VMEM footprint of one block (sublane padding included).
    per_lane = (_padded_rows(C, x3.dtype) * itemsize_x
                + _padded_rows(C, out_dtype) * itemsize_o)
    if label_lane_tiled:
        per_lane += _padded_rows(Cl, l3.dtype) * itemsize_l

    if Mk <= lanes:
        tl = Mk                                   # full-extent lane dim (legal block)
    else:
        target_x_block = 2 * 1024 * 1024          # ~2 MiB of x per block
        ws_budget = 12 * 1024 * 1024              # double-buffered working set (v5e-safe)
        tl_block = (target_x_block // (_padded_rows(C, x3.dtype) * itemsize_x)) // lanes * lanes
        tl_ws = (ws_budget // (2 * per_lane)) // lanes * lanes
        tl = max(lanes, min(tl_block, tl_ws))
        tl = min(tl, pl.cdiv(Mk, lanes) * lanes)
        if tl >= Mk:
            tl = Mk                               # single full-extent lane block
        # v7x has 2 TensorCores: prefer >= 2 grid steps along a parallel axis.
        if Nk * pl.cdiv(Mk, tl) < 2:
            half = _round_up(max(Mk // 2, 1), lanes)
            if 0 < half < Mk:
                tl = half
    # TODO(synk): for very large C (a single (C, 128) f32 block of many MiB) this
    # full-C-resident scheme bursts scoped VMEM (esp. v7x, 64 MiB); it needs an
    # online-softmax split over a third 'arbitrary' C grid axis.

    ws_bytes = 2 * per_lane * max(tl, lanes)
    vmem_limit = int(min(max(2 * ws_bytes + (4 << 20), 16 << 20), 32 << 20))

    x_spec = pl.BlockSpec((1, C, tl), lambda i, j: (i, 0, j))
    out_spec = pl.BlockSpec((1, C, tl), lambda i, j: (i, 0, j))
    n_bcast = (Nl == 1)
    if label_lane_tiled:
        lbl_spec = pl.BlockSpec((1, Cl, tl), lambda i, j: (0 if n_bcast else i, 0, j))
    else:
        lbl_spec = pl.BlockSpec((1, Cl, 1), lambda i, j: (0 if n_bcast else i, 0, 0))

    out3 = pl.pallas_call(
        _filtered_softmax_kernel,
        out_shape=jax.ShapeDtypeStruct((Nk, C, Mk), out_dtype),
        grid_spec=pltpu.PrefetchScalarGridSpec(
            num_scalar_prefetch=0,
            grid=(Nk, pl.cdiv(Mk, tl)),
            in_specs=[x_spec, lbl_spec],
            out_specs=out_spec,
        ),
        compiler_params=pltpu.CompilerParams(
            dimension_semantics=("parallel", "parallel"),
            vmem_limit_bytes=vmem_limit),
    )(x3, l3)

    if transposed:
        return jnp.moveaxis(out3.reshape(C, N, M), 0, 1).reshape(orig_shape)
    return out3.reshape(orig_shape)


def _filtered_softmax_ref(x, label):
    return jax.nn.softmax(x.astype(jnp.float32), axis=1).astype(x.dtype) * label


if __name__ == "__main__":
    key = jax.random.PRNGKey(0)
    k1, k2, k3 = jax.random.split(key, 3)

    # 1) label with the same shape as x (original test shape, NCHW).
    x = jax.random.normal(k1, (2, 4, 16, 16), dtype=jnp.float32)
    label = (jax.random.uniform(k2, (2, 4, 16, 16)) > 0.5).astype(jnp.float32)
    out = filtered_softmax(x, label)
    jax.block_until_ready(out)
    ref = _filtered_softmax_ref(x, label)
    assert out.shape == ref.shape and out.dtype == ref.dtype
    assert jnp.allclose(out, ref, atol=1e-5, rtol=1e-5)

    # 2) broadcasting label (N, C, 1, 1): exercises the no-materialization path.
    label2 = jax.random.uniform(k3, (2, 4, 1, 1), dtype=jnp.float32)
    out2 = filtered_softmax(x, label2)
    jax.block_until_ready(out2)
    ref2 = _filtered_softmax_ref(x, label2)
    assert out2.shape == ref2.shape and out2.dtype == ref2.dtype
    assert jnp.allclose(out2, ref2, atol=1e-5, rtol=1e-5)

    print("KERNEL_OK")
</pallas_src>

<mosaic_0001>
module attributes {stable_mosaic.version = 11 : i64} {
  func.func @_filtered_softmax_kernel(%arg0: i32, %arg1: i32, %arg2: memref<1x4x256xf32, #tpu.memory_space<vmem>>, %arg3: memref<1x4x256xf32, #tpu.memory_space<vmem>>, %arg4: memref<1x4x256xf32, #tpu.memory_space<vmem>>) attributes {dimension_semantics = [#tpu.dimension_semantics<parallel>, #tpu.dimension_semantics<parallel>], iteration_bounds = array<i64: 2, 1>, scalar_prefetch = 0 : i64, scratch_operands = 0 : i64, tpu.core_type = #tpu.core_type<tc>, window_params = [{transform_indices = @transform_0, window_bounds = array<i64: 1, 4, 256>}, {transform_indices = @transform_1, window_bounds = array<i64: 1, 4, 256>}, {transform_indices = @transform_2, window_bounds = array<i64: 1, 4, 256>}]} {
    %c0 = arith.constant 0 : index
    %c0_0 = arith.constant 0 : index
    %c0_1 = arith.constant 0 : index
    %0 = vector.load %arg2[%c0, %c0_0, %c0_1] : memref<1x4x256xf32, #tpu.memory_space<vmem>>, vector<1x4x256xf32>
    %cst = arith.constant dense<0xFF800000> : vector<1x256xf32>
    %1 = vector.multi_reduction <maximumf>, %0, %cst [1] : vector<1x4x256xf32> to vector<1x256xf32>
    %2 = vector.shape_cast %1 : vector<1x256xf32> to vector<1x1x256xf32>
    %3 = vector.broadcast %2 : vector<1x1x256xf32> to vector<1x4x256xf32>
    %4 = arith.subf %0, %3 : vector<1x4x256xf32>
    %5 = math.exp %4 : vector<1x4x256xf32>
    %cst_2 = arith.constant dense<0.000000e+00> : vector<1x256xf32>
    %6 = vector.multi_reduction <add>, %5, %cst_2 [1] : vector<1x4x256xf32> to vector<1x256xf32>
    %7 = vector.shape_cast %6 : vector<1x256xf32> to vector<1x1x256xf32>
    %8 = tpu.reciprocal %7 {approx = true} : vector<1x1x256xf32> -> vector<1x1x256xf32>
    %9 = arith.mulf %7, %8 : vector<1x1x256xf32>
    %cst_3 = arith.constant 2.000000e+00 : f32
    %10 = vector.broadcast %cst_3 : f32 to vector<1x1x256xf32>
    %11 = arith.subf %10, %9 : vector<1x1x256xf32>
    %12 = arith.mulf %8, %11 : vector<1x1x256xf32>
    %c0_4 = arith.constant 0 : index
    %c0_5 = arith.constant 0 : index
    %c0_6 = arith.constant 0 : index
    %13 = vector.load %arg3[%c0_4, %c0_5, %c0_6] : memref<1x4x256xf32, #tpu.memory_space<vmem>>, vector<1x4x256xf32>
    %14 = vector.broadcast %12 : vector<1x1x256xf32> to vector<1x4x256xf32>
    %15 = arith.mulf %5, %14 : vector<1x4x256xf32>
    %16 = arith.mulf %15, %13 : vector<1x4x256xf32>
    %c0_7 = arith.constant 0 : index
    %c0_8 = arith.constant 0 : index
    %c0_9 = arith.constant 0 : index
    %17 = vector.load %arg4[%c0_7, %c0_8, %c0_9] : memref<1x4x256xf32, #tpu.memory_space<vmem>>, vector<1x4x256xf32>
    tpu.vector_store %arg4[%c0_7, %c0_8, %c0_9], %16 {strides = array<i32>} : memref<1x4x256xf32, #tpu.memory_space<vmem>>, vector<1x4x256xf32>,
    return
  }
  func.func @transform_0(%arg0: i32, %arg1: i32) -> (i32, i32, i32) {
    %c0_i32 = arith.constant 0 : i32
    %c0_i32_0 = arith.constant 0 : i32
    return %arg0, %c0_i32, %arg1 : i32, i32, i32
  }
  func.func @transform_1(%arg0: i32, %arg1: i32) -> (i32, i32, i32) {
    %c0_i32 = arith.constant 0 : i32
    %c0_i32_0 = arith.constant 0 : i32
    return %arg0, %c0_i32, %arg1 : i32, i32, i32
  }
  func.func @transform_2(%arg0: i32, %arg1: i32) -> (i32, i32, i32) {
    %c0_i32 = arith.constant 0 : i32
    %c0_i32_0 = arith.constant 0 : i32
    return %arg0, %c0_i32, %arg1 : i32, i32, i32
  }
}

</mosaic_0001>

<bundles_post_ra>
// kernel: tpu_custom_call.1
= control target key start
LH: loop header
LB: loop body
LE: loop exit
PB: predicated region body
PF: predicated region fallthrough
CT: control target
= control target key end

     0   :  { %7 = vsyncpa [#allocation3], 0  ;;  %s902_s0 = inlined_call_operand.hbm [shape: f32[2,4,256], index: 0, kind: input, shape index: {}]   ;;  %s903_s1 = inlined_call_operand.hbm [shape: f32[2,4,256], index: 1, kind: input, shape index: {}]   ;;  %s904_s2 = inlined_call_operand.hbm [shape: f32[2,4,256], index: 2, kind: output, shape index: {}]  }
   0x1   :  { %9 = vsyncpa [#allocation3 + $0x1], 0 }
   0x2   :  { %10 = vsyncpa [#allocation6], 0 }
   0x3   :  { %12 = vsyncpa [#allocation6 + $0x1], 0 }
   0x4   :  { %13 = vsyncpa [#allocation4], 0 }
   0x5   :  { %15 = vsyncpa [#allocation4 + $0x1], 0  ;;  %s671_s9 = smov 0   ;;  %s673_s10 = smov 0  }
   0x6   :  { %s675_s11 = smov 0   ;;  %s677_s12 = smov 0  }
   0x7   :  { %s679_s13 = smov 0   ;;  %s681_s14 = smov 0  }
   0x8 LB: > { %s409_s15 = sadd.s32 4294967295, %s651_s14   ;;  %s410_s16 = sadd.s32 4294967294, %s651_s14   ;;  %s651_s14 = sphi %s681_s14, %s21_s14   ;;  %s647_s13 = sphi %s679_s13, %s924_s13   ;;  %s643_s12 = sphi %s677_s12, %s923_s12   ;;  %s639_s11 = sphi %s675_s11, %s922_s11   ;;  %s635_s10 = sphi %s673_s10, %s921_s10   ;;  %s631_s9 = sphi %s671_s9, %s920_s9  }
   0x9   : > { %s33_s17 = sadd.s32 1, %s647_s13  ;;  %s42_s18 = sadd.s32 1, %s639_s11 }
   0xa   : > { %p35_p0 = scmp.ge.s32.totalorder %s33_s17, 2  ;;  %p49_p1 = scmp.ne.s32.totalorder %s639_s11, %s635_s10 }
   0xb   : > { %p50_p2 = scmp.eq.s32.totalorder %s651_s14, 0  ;;  %p55_p3 = scmp.ne.s32.totalorder %s635_s10, %s631_s9 }
   0xc   : > { %s926_s17 = smov (%p35_p0, %s33_s17), 0  ;;  %p56_p5 = scmp.eq.s32.totalorder %s409_s15, 0 }
   0xd   : > { %p712_p4 = por %p50_p2, %p49_p1  ;;  %s37_s20 = ssub.s32 %s647_s13, %s926_s17 }
   0xe   : > { %p109_p6 = scmp.eq.s32.totalorder %s409_s15, 1  ;;  %p40_p7 = scmp.eq.s32.totalorder %s37_s20, 0 }
   0xf   : > { %p718_p8 = por %p56_p5, %p55_p3  ;;  %p115_p10 = scmp.eq.s32.totalorder %s410_s16, 1 }
  0x10   : > { %p722_p9 = por %p109_p6, %p49_p1  ;;  %p448_p13 = scmp.lt.s32.totalorder %s651_s14, 2 }
  0x11   : > { %s908_s21 = scalar_select %p718_p8, 1, 0 }
  0x12   : > { %s909_s22 = scalar_select %p722_p9, 1, 0 }
  0x13   : > { %s727_s23 = scalar_select %p40_p7, %s639_s11, %s42_s18  }
  0x14   : > { %p729_p11 = por %p115_p10, %p55_p3  ;;  %s736_s25 = sand.u32 1, %s639_s11  }
  0x15   : > { %s413_s26 = sshll.u32 %s736_s25, 3  ;;  %s428_s27 = sshll.u32 %s647_s13, 7 }
  0x16   : > { %s910_s24 = scalar_select %p729_p11, 1, 0 }
  0x17   : > { %s745_s30 = scalar_lea.hbm %s902_s0, %s428_s27  ;;  %s139_s3 = scalar_lea.vmem [#allocation2], %s413_s26 }
  0x18   : > { %s149_s4 = sshll.u32 %s139_s3, 4  ;;  %p753_p0 = pnand %p448_p13, %p712_p4  ;;  %s749_s4 = int_to_ptr.vmem [resolvable:$true] %s149_s4 }
  0x19   : > { %s136_s6 = scalar_lea.sflag [#allocation3], %s736_s25  ;;  %s505_s7 = scalar_lea.hbm %s745_s30, 128 }
  0x1a   : > { %p506_p3 = scmp.ne.s32.totalorder %s745_s30, %s505_s7  ;;  %p507_p5 = pneg %p753_p0 }
  0x1b   : > { %s510_s16 = scalar_lea.hbm %s902_s0, 256  ;;  %p511_p4 = scmp.lt.u32.totalorder %s745_s30, %s902_s0 }
  0x1c   : > { %p508_p6 = pnand %p507_p5, %p506_p3  ;;  %p512_p10 = scmp.lt.u32.totalorder %s510_s16, %s505_s7 }
  0x1d   : > { %p514_p12 = scmp.lt.u32.totalorder %s505_s7, %s745_s30 }
  0x1e   : > { %p509_p7 = pneg %p508_p6  ;;  %p513_p13 = por %p512_p10, %p511_p4 }
  0x20   : > { %p515_p1 = por %p514_p12, %p513_p13 }
  0x22   : > { %p516_p2 = pnand %p515_p1, %p509_p7 }
  0x24   : > { %519 = shalt.err (!%p516_p2)
}
  0x25   : > { %s520_s20 = scalar_lea.vmem %s749_s4, 128  ;;  %s653_s28 = smov [#allocation2]  }
  0x26   : > { %p521_p3 = scmp.ne.s32.totalorder %s749_s4, %s520_s20  ;;  %s525_s29 = sshll.u32 %s653_s28, 4  ;;  %s526_s29 = int_to_ptr.vmem [resolvable:$false] %s525_s29 }
  0x27   : > { %s527_s3 = scalar_lea.vmem %s526_s29, 256  ;;  %p528_p9 = scmp.lt.s32.totalorder %s749_s4, %s526_s29 }
  0x28   : > { %p523_p6 = pnand %p521_p3, %p507_p5  ;;  %p529_p4 = scmp.lt.s32.totalorder %s527_s3, %s520_s20 }
  0x2a   : > { %p524_p11 = pneg %p523_p6  ;;  %p530_p10 = por %p529_p4, %p528_p9 }
  0x2c   : > { %p531_p12 = pnand %p530_p10, %p524_p11 }
  0x2e   : > { %534 = shalt.err (!%p531_p12)
}
  0x2f   : > { %440 = dma.hbm_to_vmem [thread:$0]  (!%p753_p0), %s745_s30, 128, %s749_s4, %s136_s6  }
  0x30   : > { %p912_p1 = scmp.lt.s32.totalorder %s651_s14, 3  ;;  %p913_p2 = scmp.ge.s32.totalorder %s651_s14, 1 }
  0x31   : > { %s798_s16 = scalar_lea.hbm %s903_s1, %s428_s27  ;;  %s160_s18 = scalar_lea.vmem [#allocation5], %s413_s26 }
  0x32   : > { %p789_p7 = pnand %p913_p2, %p912_p1  ;;  %s170_s19 = sshll.u32 %s160_s18, 4  ;;  %s171_s19 = int_to_ptr.vmem [resolvable:$true] %s170_s19 }
  0x33   : > { %s157_s30 = scalar_lea.sflag [#allocation6], %s736_s25  ;;  %s535_s4 = scalar_lea.hbm %s798_s16, 128 }
  0x34   : > { %s914_s7 = scalar_select %p789_p7, 1, 0 }
  0x35   : > { %p536_p9 = scmp.ne.s32.totalorder %s798_s16, %s535_s4  ;;  %s540_s27 = scalar_lea.hbm %s903_s1, 256 }
  0x36   : > { %p541_p3 = scmp.lt.u32.totalorder %s798_s16, %s903_s1  ;;  %p542_p6 = scmp.lt.u32.totalorder %s540_s27, %s535_s4 }
  0x37   : > { %p538_p11 = pnand %p536_p9, %p507_p5  ;;  %p544_p10 = scmp.lt.u32.totalorder %s535_s4, %s798_s16 }
  0x38   : > { %p543_p4 = por %p542_p6, %p541_p3 }
  0x39   : > { %p539_p13 = pneg %p538_p11 }
  0x3a   : > { %p545_p12 = por %p544_p10, %p543_p4 }
  0x3c   : > { %p546_p1 = pnand %p545_p12, %p539_p13 }
  0x3e   : > { %549 = shalt.err (!%p546_p1)
}
  0x3f   : > { %s550_s25 = scalar_lea.vmem %s171_s19, 128  ;;  %s654_s26 = smov [#allocation5]  }
  0x40   : > { %p551_p2 = scmp.ne.s32.totalorder %s171_s19, %s550_s25  ;;  %s555_s3 = sshll.u32 %s654_s26, 4  ;;  %s556_s3 = int_to_ptr.vmem [resolvable:$false] %s555_s3 }
  0x41   : > { %s557_s8 = scalar_lea.vmem %s556_s3, 256  ;;  %p558_p8 = scmp.lt.s32.totalorder %s171_s19, %s556_s3 }
  0x42   : > { %p553_p9 = pnand %p551_p2, %p507_p5  ;;  %p559_p7 = scmp.lt.s32.totalorder %s557_s8, %s550_s25 }
  0x44   : > { %p554_p11 = pneg %p553_p9  ;;  %p560_p3 = por %p559_p7, %p558_p8 }
  0x46   : > { %p561_p6 = pnand %p560_p3, %p554_p11 }
  0x48   : > { %564 = shalt.err (!%p561_p6)
}
  0x49   : > { %443 = dma.hbm_to_vmem [thread:$0]  (!%p753_p0), %s798_s16, 128, %s171_s19, %s157_s30  }
  0x4a   : > { %p915_p13 = scmp.ne.s32.totalorder %s914_s7, 0 }
  0x4b   : > { %s825_s15 = sand.u32 (!%p915_p13), 1, %s635_s10   ;;  %p916_p8 = scmp.ne.s32.totalorder (!%p915_p13), %s908_s21, 0 }
  0x4c   : > { %179 = sbr.rel (%p915_p13) target bundleno = 171 (0xab), region = 28  ;;  %s828_s18 = sshll.u32 (!%p915_p13), %s825_s15, 3 }
  0x4d   : > { %s182_s4 = scalar_lea.sflag (!%p915_p13), [#allocation3], %s825_s15  ;;  %s185_s6 = scalar_lea.vmem (!%p915_p13), [#allocation2], %s828_s18 }
  0x53   : > { %618 = dma.done.wait (%p916_p8), %s182_s4, 128  }
  0x54   : > { %620 = vsyncadd (%p916_p8), %s182_s4, 4294967168  ;;  %s191_s5 = scalar_lea.sflag [#allocation6], %s825_s15  ;;  %s194_s7 = scalar_lea.vmem [#allocation5], %s828_s18 }
  0x55   : > { %622 = dma.done.wait (%p916_p8), %s191_s5, 128  }
  0x56   : > { %624 = vsyncadd (%p916_p8), %s191_s5, 4294967168  ;;  %vm227_vm0 = vcmask 1043456   ;;  %v223_v0 = vld [vmem:[%s185_s6] sm:$0xff]  ;;  %v274_v44 = vld [vmem:[%s194_s7] sm:$0xff]  ;;  %s219_s21 = scalar_lea.vmem [#allocation7], %s828_s18  ;;  %s430_s19 = sshll.u32 %s643_s12, 7 }
  0x57   : > { %v225_v1 = vcombine.high %v223_v0, %v223_v0  ;;  %v228_v2 = vsel %vm227_vm0, %v223_v0, -inf  ;;  %s299_s16 = sshll.u32 %s219_s21, 4  ;;  %s855_s27 = scalar_lea.hbm %s904_s2, %s430_s19  ;;  %s850_s16 = int_to_ptr.vmem [resolvable:$true] %s299_s16 }
  0x58   : > { %v229_v3 = vrot.slane %v228_v2, 4  ;;  %s283_s28 = scalar_lea.sflag [#allocation4], %s825_s15  ;;  %s565_s29 = scalar_lea.vmem %s850_s16, 128 }
  0x59   : > { %v235_v4 = vsel %vm227_vm0, %v225_v1, -inf  ;;  %p566_p0 = scmp.ne.s32.totalorder %s850_s16, %s565_s29  ;;  %p917_p5 = scmp.ne.s32.totalorder %s909_s22, 0 }
  0x5a   : > { %v230_v5 = vmax.f32 %v228_v2, %v229_v3  ;;  %v236_v6 = vrot.slane %v235_v4, 4  ;;  %s655_s12 = smov [#allocation7]  }
  0x5b   : > { %p567_p7 = pnand %p566_p0, %p917_p5  ;;  %s569_s25 = sshll.u32 %s655_s12, 4  ;;  %s570_s25 = int_to_ptr.vmem [resolvable:$false] %s569_s25 }
  0x5c   : > { %v231_v7 = vrot.slane %v230_v5, 2  ;;  %v237_v8 = vmax.f32 %v235_v4, %v236_v6  ;;  %s571_s26 = scalar_lea.vmem %s570_s25, 256  ;;  %p572_p10 = scmp.lt.s32.totalorder %s850_s16, %s570_s25 }
  0x5d   : > { %p568_p4 = pneg %p567_p7  ;;  %p573_p12 = scmp.lt.s32.totalorder %s571_s26, %s565_s29 }
  0x5e   : > { %v232_v9 = vmax.f32 %v230_v5, %v231_v7  ;;  %v238_v10 = vrot.slane %v237_v8, 2 }
  0x5f   : > { %p574_p1 = por %p573_p12, %p572_p10 }
  0x60   : > { %v233_v11 = vrot.slane %v232_v9, 1  ;;  %v239_v12 = vmax.f32 %v237_v8, %v238_v10 }
  0x61   : > { %p575_p2 = pnand %p574_p1, %p568_p4 }
  0x62   : > { %v234_v13 = vmax.f32 %v232_v9, %v233_v11  ;;  %v240_v14 = vrot.slane %v239_v12, 1 }
  0x64   : > { %v241_v15 = vmax.f32 %v239_v12, %v240_v14 }
  0x66   : > { %v244_v16 = vcombine.low %v234_v13, %v241_v15 }
  0x68   : > { %v246_v17 = vsub.f32 %v223_v0, %v244_v16 }
  0x6a   : > { %v247_v18 = vmul.f32 1.442695, %v246_v17 }
  0x6c   : > { %499 = vpow2.f32 %v247_v18 }
  0x76   : > { %v500_v19 = vpop.eup %499 }
  0x77   : > { %v250_v20 = vcombine.high %v500_v19, %v500_v19  ;;  %v252_v21 = vsel %vm227_vm0, %v500_v19, 0.0 }
  0x78   : > { %v253_v22 = vrot.slane %v252_v21, 4 }
  0x79   : > { %v259_v23 = vsel %vm227_vm0, %v250_v20, 0.0 }
  0x7a   : > { %v254_v24 = vadd.f32 %v253_v22, %v252_v21  ;;  %v260_v25 = vrot.slane %v259_v23, 4 }
  0x7c   : > { %v255_v26 = vrot.slane %v254_v24, 2  ;;  %v261_v27 = vadd.f32 %v260_v25, %v259_v23 }
  0x7e   : > { %v256_v28 = vadd.f32 %v255_v26, %v254_v24  ;;  %v262_v29 = vrot.slane %v261_v27, 2 }
  0x80   : > { %v257_v30 = vrot.slane %v256_v28, 1  ;;  %v263_v31 = vadd.f32 %v262_v29, %v261_v27 }
  0x82   : > { %v258_v32 = vadd.f32 %v257_v30, %v256_v28  ;;  %v264_v33 = vrot.slane %v263_v31, 1 }
  0x84   : > { %v265_v34 = vadd.f32 %v264_v33, %v263_v31  ;;  %501 = vrcp.f32 %v258_v32 }
  0x86   : > { %503 = vrcp.f32 %v265_v34 }
  0x8e   : > { %v502_v35 = vpop.eup %501 }
  0x8f   : > { %v268_v36 = vmul.f32 %v502_v35, %v258_v32 }
  0x90   : > { %v504_v37 = vpop.eup %503 }
  0x91   : > { %v269_v38 = vmul.f32 %v504_v37, %v265_v34  ;;  %v270_v39 = vsub.f32 2.0, %v268_v36 }
  0x93   : > { %v271_v40 = vsub.f32 2.0, %v269_v38  ;;  %v272_v41 = vmul.f32 %v502_v35, %v270_v39 }
  0x95   : > { %v273_v42 = vmul.f32 %v504_v37, %v271_v40 }
  0x97   : > { %v277_v43 = vcombine.low %v272_v41, %v273_v42 }
  0x99   : > { %v279_v45 = vmul.f32 %v500_v19, %v277_v43 }
  0x9b   : > { %v280_v46 = vmul.f32 %v279_v45, %v274_v44 }
  0x9d   : > { %281 = vst [vmem:[%s219_s21] sm:$0xff] %v280_v46 }
  0x9e   : > { %578 = shalt.err (!%p575_p2)
}
  0x9f   : > { %s579_s3 = scalar_lea.hbm %s855_s27, 128  ;;  %s583_s18 = scalar_lea.hbm %s904_s2, 256 }
  0xa0   : > { %p580_p9 = scmp.ne.s32.totalorder %s855_s27, %s579_s3  ;;  %p584_p6 = scmp.lt.u32.totalorder %s855_s27, %s904_s2 }
  0xa1   : > { %p585_p13 = scmp.lt.u32.totalorder %s583_s18, %s579_s3  ;;  %p587_p0 = scmp.lt.u32.totalorder %s579_s3, %s855_s27 }
  0xa2   : > { %p581_p11 = pnand %p580_p9, %p917_p5 }
  0xa3   : > { %p586_p8 = por %p585_p13, %p584_p6 }
  0xa4   : > { %p582_p3 = pneg %p581_p11 }
  0xa5   : > { %p588_p7 = por %p587_p0, %p586_p8 }
  0xa7   : > { %p589_p4 = pnand %p588_p7, %p582_p3 }
  0xa9   : > { %592 = shalt.err (!%p589_p4)
}
  0xaa   : > { %435 = dma.vmem_to_hbm [thread:$0]  (%p917_p5), %s850_s16, 128, %s855_s27, %s283_s28  }
  0xab PF: > { %s311_s5 = sand.u32 1, %s631_s9   ;;  %p918_p10 = scmp.ne.s32.totalorder %s910_s24, 0 }
  0xac   : > { %p919_p12 = scmp.ge.s32.totalorder %s651_s14, 2  ;;  %s312_s7 = scalar_lea.sflag [#allocation4], %s311_s5 }
  0xae   : > { %p445_p1 = pnand %p919_p12, %p918_p10 }
  0xb0   : > { %626 = dma.done.wait (!%p445_p1), %s312_s7, 128  }
  0xb1   : > { %628 = vsyncadd (!%p445_p1), %s312_s7, 4294967168  ;;  %s21_s14 = sadd.s32 1, %s651_s14   ;;  %s920_s9 = smov %s635_s10 }
  0xb2   : > { %p18_p2 = scmp.ge.s32.totalorder %s21_s14, 4   ;;  %s921_s10 = smov %s639_s11 }
  0xb3   : > { %s922_s11 = smov %s727_s23  ;;  %s923_s12 = smov %s647_s13 }
  0xb4   : > { %s924_s13 = smov %s926_s17  ;;  %20 = sbr.rel (!%p18_p2) target bundleno = 8 (0x8), region = 86 }
  0xbb   :  { %317 = vsyncpa [#allocation3], 1 }
  0xbc   :  { %319 = vsyncpa [#allocation3 + $0x1], 1 }
  0xbd   :  { %320 = vsyncpa [#allocation6], 1 }
  0xbe   :  { %322 = vsyncpa [#allocation6 + $0x1], 1 }
  0xbf   :  { %323 = vsyncpa [#allocation4], 1 }
  0xc0   :  { %325 = vsyncpa [#allocation4 + $0x1], 1 }

</bundles_post_ra>
